<compile_context>
chip_gen: v7x
topology: tpu7x:2x2x1
jax: 0.10.0
libtpu: 0.0.40
codegen_flags: <defaults>
</compile_context>

<pallas_src>
import math

import jax
import jax.numpy as jnp
from jax.experimental import pallas as pl
from jax.experimental.pallas import tpu as pltpu

# ----------------------------- model dims ----------------------------------
B = 2          # batch
S = 8          # sequence length
H = 32         # hidden size
NH = 2         # attention heads
HD = H // NH   # head dim
F = 64         # FFN intermediate
V = 64         # vocab size (stand-in)
BS = B * S     # batch folded onto sublanes
LN_EPS = 1e-12
VEC_ROWS = 16  # packed bias / LayerNorm slab rows (padded to a sublane multiple)

# rows of the packed (VEC_ROWS, 128) bias/LayerNorm slab
(ROW_B_QKV, ROW_B_O, ROW_LN1_G, ROW_LN1_B,
 ROW_B1, ROW_B2, ROW_LN2_G, ROW_LN2_B, ROW_B_QA) = range(9)


# --------------------------- Pallas kernel ----------------------------------
def _layernorm(x, gamma, beta):
    mu = jnp.mean(x, axis=-1, keepdims=True)
    var = jnp.mean((x - mu) ** 2, axis=-1, keepdims=True)
    return (x - mu) * jax.lax.rsqrt(var + LN_EPS) * gamma + beta


def fused_encoder_qa_kernel(x_ref, mpk_ref,
                            wqkv_ref, wo_ref, w1_ref, w2_ref, wqa_ref, vecs_ref,
                            out_ref):
    """One BERT-style encoder layer + QA head for the whole (B*S, H) slab."""
    x = x_ref[...]                              # (BS, H) f32
    mpk = mpk_ref[...]                          # (BS, 128) packed masks
    bias = mpk[:, 0:BS]                         # (BS, BS) additive attn bias (0 / -1e9)
    keep = mpk[:, BS:BS + 1]                    # (BS, 1) 1.0 = keep, 0.0 = pad
    vecs = vecs_ref[...]                        # (VEC_ROWS, 128) packed biases / LN params

    b_qkv = vecs[ROW_B_QKV:ROW_B_QKV + 1, 0:3 * H]   # (1, 3H)
    b_o   = vecs[ROW_B_O:ROW_B_O + 1, 0:H]
    ln1_g = vecs[ROW_LN1_G:ROW_LN1_G + 1, 0:H]
    ln1_b = vecs[ROW_LN1_B:ROW_LN1_B + 1, 0:H]
    b_1   = vecs[ROW_B1:ROW_B1 + 1, 0:F]
    b_2   = vecs[ROW_B2:ROW_B2 + 1, 0:H]
    ln2_g = vecs[ROW_LN2_G:ROW_LN2_G + 1, 0:H]
    ln2_b = vecs[ROW_LN2_B:ROW_LN2_B + 1, 0:H]
    b_qa  = vecs[ROW_B_QA:ROW_B_QA + 1, :]           # (1, 128)

    # ---- fused QKV projection: one (BS,H)x(H,3H) MXU push ----
    qkv = jnp.dot(x, wqkv_ref[...], preferred_element_type=jnp.float32) + b_qkv
    q = qkv[:, 0:H]
    k = qkv[:, H:2 * H]
    v = qkv[:, 2 * H:3 * H]

    # ---- multi-head self-attention over the whole slab ----
    # Cross-batch and padded-key attention is disabled via the additive bias,
    # so no per-batch loop / grid axis is needed.
    wo = wo_ref[...]
    scale = 1.0 / math.sqrt(HD)
    attn = jnp.zeros((BS, H), jnp.float32)
    for h in range(NH):                                       # static unroll over heads
        lo, hi = h * HD, (h + 1) * HD
        qh, kh, vh = q[:, lo:hi], k[:, lo:hi], v[:, lo:hi]
        s = jax.lax.dot_general(qh, kh, (((1,), (1,)), ((), ())),
                                preferred_element_type=jnp.float32) * scale + bias
        m = jnp.max(s, axis=-1, keepdims=True)
        e = jnp.exp(s - m)
        p = e * pl.reciprocal(jnp.sum(e, axis=-1, keepdims=True), approx=True)
        ctx_h = jnp.dot(p, vh, preferred_element_type=jnp.float32)        # (BS, HD)
        # Wo-split rewrite: no lane-axis concat of per-head contexts.
        attn = attn + jnp.dot(ctx_h, wo[lo:hi, :], preferred_element_type=jnp.float32)
    attn = attn + b_o

    h1 = _layernorm(x + attn, ln1_g, ln1_b)

    # ---- feed-forward ----
    ff = jnp.dot(h1, w1_ref[...], preferred_element_type=jnp.float32) + b_1
    ff = jax.nn.gelu(ff, approximate=True)
    ff = jnp.dot(ff, w2_ref[...], preferred_element_type=jnp.float32) + b_2
    h2 = _layernorm(h1 + ff, ln2_g, ln2_b)

    # ---- QA head: Linear(H->2) (lane-padded to 128) + masked_fill(-inf)
    #      + softmax over the sequence axis (per batch element) ----
    logits = jnp.dot(h2, wqa_ref[...], preferred_element_type=jnp.float32) + b_qa  # (BS, 128)
    logits = jnp.where(keep == 0.0, -jnp.inf, logits)
    for b in range(B):                                        # static unroll over batch
        lg = logits[b * S:(b + 1) * S, :]                     # (S, 128) sublane-aligned slice
        mx = jnp.max(lg, axis=0, keepdims=True)
        e = jnp.exp(lg - mx)
        probs = e / jnp.sum(e, axis=0, keepdims=True)         # exact divide for the head
        out_ref[b * S:(b + 1) * S, :] = probs.astype(out_ref.dtype)


# ------------------------------ wrapper --------------------------------------
def qa_model_forward(input_ids, attention_mask, token_type_ids, params):
    """Reproduces QAModel.forward(labels=None) -> probs of shape (B, S, 2)."""
    p = params

    # --- embedding stage (plain JAX glue: gathers + embedding LayerNorm) ---
    emb = (p["tok_emb"][input_ids]
           + p["pos_emb"][jnp.arange(S)][None, :, :]
           + p["typ_emb"][token_type_ids])
    mu = jnp.mean(emb, axis=-1, keepdims=True)
    var = jnp.mean((emb - mu) ** 2, axis=-1, keepdims=True)
    emb = (emb - mu) * jax.lax.rsqrt(var + LN_EPS) * p["emb_ln_g"] + p["emb_ln_b"]
    x = emb.reshape(BS, H).astype(jnp.float32)

    # --- packed masks: block-diagonal additive attention bias + QA keep flag ---
    am = attention_mask.astype(jnp.float32)                      # (B, S)
    key_keep = am.reshape(BS)                                    # (BS,)
    same_batch = jnp.kron(jnp.eye(B, dtype=jnp.float32),
                          jnp.ones((S, S), jnp.float32))         # (BS, BS)
    allowed = same_batch * key_keep[None, :]
    attn_bias = (1.0 - allowed) * -1e9
    mask_pack = jnp.zeros((BS, 128), jnp.float32)
    mask_pack = mask_pack.at[:, :BS].set(attn_bias)
    mask_pack = mask_pack.at[:, BS].set(key_keep)

    full = lambda shape: pl.BlockSpec(shape, lambda i: (0,) * len(shape))
    out = pl.pallas_call(
        fused_encoder_qa_kernel,
        out_shape=jax.ShapeDtypeStruct((BS, 128), jnp.float32),
        grid=(1,),
        in_specs=[
            full((BS, H)),            # x
            full((BS, 128)),          # packed masks
            full((H, 3 * H)),         # fused Wqkv
            full((H, H)),             # Wo
            full((H, F)),             # W1
            full((F, H)),             # W2
            full((H, 128)),           # qa weight (lane-padded)
            full((VEC_ROWS, 128)),    # packed biases / LayerNorm params
        ],
        out_specs=full((BS, 128)),
    )(x, mask_pack, p["w_qkv"], p["w_o"], p["w1"], p["w2"], p["w_qa"], p["vecs"])

    # lane-dense kernel output -> (B, S, 2)
    return out[:, :2].reshape(B, S, 2)


# ---------------------------- param init ------------------------------------
def init_params(key):
    ks = jax.random.split(key, 16)
    n = lambda k, shape, s=0.02: (s * jax.random.normal(k, shape)).astype(jnp.float32)

    wq, wk, wv = n(ks[3], (H, H)), n(ks[4], (H, H)), n(ks[5], (H, H))
    w_qkv = jnp.concatenate([wq, wk, wv], axis=1)                      # (H, 3H)

    w_qa = jnp.zeros((H, 128), jnp.float32).at[:, :2].set(n(ks[9], (H, 2)))

    vecs = jnp.zeros((VEC_ROWS, 128), jnp.float32)
    vecs = vecs.at[ROW_B_QKV, :3 * H].set(n(ks[10], (3 * H,), 0.01))
    vecs = vecs.at[ROW_B_O, :H].set(n(ks[11], (H,), 0.01))
    vecs = vecs.at[ROW_LN1_G, :H].set(1.0)                             # ln1 gamma
    vecs = vecs.at[ROW_B1, :F].set(n(ks[12], (F,), 0.01))
    vecs = vecs.at[ROW_B2, :H].set(n(ks[13], (H,), 0.01))
    vecs = vecs.at[ROW_LN2_G, :H].set(1.0)                             # ln2 gamma
    vecs = vecs.at[ROW_B_QA, :2].set(n(ks[14], (2,), 0.01))
    # ROW_LN1_B / ROW_LN2_B (LayerNorm betas) stay zero.

    return {
        "tok_emb": n(ks[0], (V, H)),
        "pos_emb": n(ks[1], (S, H)),
        "typ_emb": n(ks[2], (2, H)),
        "emb_ln_g": jnp.ones((1, 1, H), jnp.float32),
        "emb_ln_b": jnp.zeros((1, 1, H), jnp.float32),
        "w_qkv": w_qkv,
        "w_o": n(ks[6], (H, H)),
        "w1": n(ks[7], (H, F)),
        "w2": n(ks[8], (F, H)),
        "w_qa": w_qa,
        "vecs": vecs,
    }


# --------------------------------- main --------------------------------------
if __name__ == "__main__":
    key = jax.random.PRNGKey(0)
    kp, kid = jax.random.split(key)
    params = init_params(kp)

    input_ids = jax.random.randint(kid, (B, S), 0, V, dtype=jnp.int32)
    # batch 0: no padding; batch 1: last 3 positions padded
    attention_mask = jnp.array(
        [[1, 1, 1, 1, 1, 1, 1, 1],
         [1, 1, 1, 1, 1, 0, 0, 0]], dtype=jnp.int32)
    token_type_ids = jnp.zeros((B, S), dtype=jnp.int32)

    probs = qa_model_forward(input_ids, attention_mask, token_type_ids, params)
    probs = jax.block_until_ready(probs)

    assert probs.shape == (B, S, 2)
    # softmax over the sequence dim must sum to 1 per (batch, start/end) slot
    col_sums = jnp.sum(probs, axis=1)
    assert bool(jnp.all(jnp.abs(col_sums - 1.0) < 1e-4))
    # padded positions must get zero probability
    assert bool(jnp.all(probs[1, 5:, :] < 1e-6))

    print("KERNEL_OK")
</pallas_src>

<mosaic_0001>
module attributes {stable_mosaic.version = 11 : i64} {
  func.func @fused_encoder_qa_kernel(%arg0: i32, %arg1: memref<16x32xf32, #tpu.memory_space<vmem>>, %arg2: memref<16x128xf32, #tpu.memory_space<vmem>>, %arg3: memref<32x96xf32, #tpu.memory_space<vmem>>, %arg4: memref<32x32xf32, #tpu.memory_space<vmem>>, %arg5: memref<32x64xf32, #tpu.memory_space<vmem>>, %arg6: memref<64x32xf32, #tpu.memory_space<vmem>>, %arg7: memref<32x128xf32, #tpu.memory_space<vmem>>, %arg8: memref<16x128xf32, #tpu.memory_space<vmem>>, %arg9: memref<16x128xf32, #tpu.memory_space<vmem>>) attributes {dimension_semantics = [#tpu.dimension_semantics<arbitrary>], iteration_bounds = array<i64: 1>, scalar_prefetch = 0 : i64, scratch_operands = 0 : i64, tpu.core_type = #tpu.core_type<tc>, window_params = [{pipeline_mode = #tpu.pipeline_mode<synchronous>, transform_indices = @transform_0, window_bounds = array<i64: 16, 32>}, {pipeline_mode = #tpu.pipeline_mode<synchronous>, transform_indices = @transform_1, window_bounds = array<i64: 16, 128>}, {pipeline_mode = #tpu.pipeline_mode<synchronous>, transform_indices = @transform_2, window_bounds = array<i64: 32, 96>}, {pipeline_mode = #tpu.pipeline_mode<synchronous>, transform_indices = @transform_3, window_bounds = array<i64: 32, 32>}, {pipeline_mode = #tpu.pipeline_mode<synchronous>, transform_indices = @transform_4, window_bounds = array<i64: 32, 64>}, {pipeline_mode = #tpu.pipeline_mode<synchronous>, transform_indices = @transform_5, window_bounds = array<i64: 64, 32>}, {pipeline_mode = #tpu.pipeline_mode<synchronous>, transform_indices = @transform_6, window_bounds = array<i64: 32, 128>}, {pipeline_mode = #tpu.pipeline_mode<synchronous>, transform_indices = @transform_7, window_bounds = array<i64: 16, 128>}, {pipeline_mode = #tpu.pipeline_mode<synchronous>, transform_indices = @transform_8, window_bounds = array<i64: 16, 128>}]} {
    %c0 = arith.constant 0 : index
    %c0_0 = arith.constant 0 : index
    %0 = vector.load %arg1[%c0, %c0_0] : memref<16x32xf32, #tpu.memory_space<vmem>>, vector<16x32xf32>
    %c0_1 = arith.constant 0 : index
    %c0_2 = arith.constant 0 : index
    %1 = vector.load %arg2[%c0_1, %c0_2] : memref<16x128xf32, #tpu.memory_space<vmem>>, vector<16x128xf32>
    %2 = vector.extract_strided_slice %1 {offsets = [0, 0], sizes = [16, 16], strides = [1, 1]} : vector<16x128xf32> to vector<16x16xf32>
    %3 = vector.extract_strided_slice %1 {offsets = [0, 16], sizes = [16, 1], strides = [1, 1]} : vector<16x128xf32> to vector<16x1xf32>
    %c0_3 = arith.constant 0 : index
    %c0_4 = arith.constant 0 : index
    %4 = vector.load %arg8[%c0_3, %c0_4] : memref<16x128xf32, #tpu.memory_space<vmem>>, vector<16x128xf32>
    %5 = vector.extract_strided_slice %4 {offsets = [0, 0], sizes = [1, 96], strides = [1, 1]} : vector<16x128xf32> to vector<1x96xf32>
    %6 = vector.extract_strided_slice %4 {offsets = [1, 0], sizes = [1, 32], strides = [1, 1]} : vector<16x128xf32> to vector<1x32xf32>
    %7 = vector.extract_strided_slice %4 {offsets = [2, 0], sizes = [1, 32], strides = [1, 1]} : vector<16x128xf32> to vector<1x32xf32>
    %8 = vector.extract_strided_slice %4 {offsets = [3, 0], sizes = [1, 32], strides = [1, 1]} : vector<16x128xf32> to vector<1x32xf32>
    %9 = vector.extract_strided_slice %4 {offsets = [4, 0], sizes = [1, 64], strides = [1, 1]} : vector<16x128xf32> to vector<1x64xf32>
    %10 = vector.extract_strided_slice %4 {offsets = [5, 0], sizes = [1, 32], strides = [1, 1]} : vector<16x128xf32> to vector<1x32xf32>
    %11 = vector.extract_strided_slice %4 {offsets = [6, 0], sizes = [1, 32], strides = [1, 1]} : vector<16x128xf32> to vector<1x32xf32>
    %12 = vector.extract_strided_slice %4 {offsets = [7, 0], sizes = [1, 32], strides = [1, 1]} : vector<16x128xf32> to vector<1x32xf32>
    %13 = vector.extract_strided_slice %4 {offsets = [8, 0], sizes = [1, 128], strides = [1, 1]} : vector<16x128xf32> to vector<1x128xf32>
    %c0_5 = arith.constant 0 : index
    %c0_6 = arith.constant 0 : index
    %14 = vector.load %arg3[%c0_5, %c0_6] : memref<32x96xf32, #tpu.memory_space<vmem>>, vector<32x96xf32>
    %cst = arith.constant dense<0.000000e+00> : vector<16x96xf32>
    %15 = tpu.matmul %0, %14, %cst {dimension_numbers = #tpu.dot_dimension_numbers<[1], [0], [0], [1], [0, 0, 1, 1], [], []>} : vector<16x32xf32>, vector<32x96xf32>, vector<16x96xf32> -> vector<16x96xf32>
    %16 = vector.broadcast %5 : vector<1x96xf32> to vector<16x96xf32>
    %17 = arith.addf %15, %16 : vector<16x96xf32>
    %18 = vector.extract_strided_slice %17 {offsets = [0, 0], sizes = [16, 32], strides = [1, 1]} : vector<16x96xf32> to vector<16x32xf32>
    %19 = vector.extract_strided_slice %17 {offsets = [0, 32], sizes = [16, 32], strides = [1, 1]} : vector<16x96xf32> to vector<16x32xf32>
    %20 = vector.extract_strided_slice %17 {offsets = [0, 64], sizes = [16, 32], strides = [1, 1]} : vector<16x96xf32> to vector<16x32xf32>
    %c0_7 = arith.constant 0 : index
    %c0_8 = arith.constant 0 : index
    %21 = vector.load %arg4[%c0_7, %c0_8] : memref<32x32xf32, #tpu.memory_space<vmem>>, vector<32x32xf32>
    %cst_9 = arith.constant 0.000000e+00 : f32
    %22 = vector.broadcast %cst_9 : f32 to vector<16x32xf32>
    %23 = vector.extract_strided_slice %18 {offsets = [0, 0], sizes = [16, 16], strides = [1, 1]} : vector<16x32xf32> to vector<16x16xf32>
    %24 = vector.extract_strided_slice %19 {offsets = [0, 0], sizes = [16, 16], strides = [1, 1]} : vector<16x32xf32> to vector<16x16xf32>
    %25 = vector.extract_strided_slice %20 {offsets = [0, 0], sizes = [16, 16], strides = [1, 1]} : vector<16x32xf32> to vector<16x16xf32>
    %cst_10 = arith.constant dense<0.000000e+00> : vector<16x16xf32>
    %26 = tpu.matmul %23, %24, %cst_10 {dimension_numbers = #tpu.dot_dimension_numbers<[1], [1], [0], [0], [0, 0, 1, 0], [], []>} : vector<16x16xf32>, vector<16x16xf32>, vector<16x16xf32> -> vector<16x16xf32>
    %cst_11 = arith.constant 2.500000e-01 : f32
    %27 = vector.broadcast %cst_11 : f32 to vector<16x16xf32>
    %28 = arith.mulf %26, %27 : vector<16x16xf32>
    %29 = arith.addf %28, %2 : vector<16x16xf32>
    %cst_12 = arith.constant dense<0xFF800000> : vector<16xf32>
    %30 = vector.multi_reduction <maximumf>, %29, %cst_12 [1] : vector<16x16xf32> to vector<16xf32>
    %31 = vector.shape_cast %30 : vector<16xf32> to vector<16x1xf32>
    %32 = vector.broadcast %31 : vector<16x1xf32> to vector<16x16xf32>
    %33 = arith.subf %29, %32 : vector<16x16xf32>
    %34 = math.exp %33 : vector<16x16xf32>
    %cst_13 = arith.constant dense<0.000000e+00> : vector<16xf32>
    %35 = vector.multi_reduction <add>, %34, %cst_13 [1] : vector<16x16xf32> to vector<16xf32>
    %36 = vector.shape_cast %35 : vector<16xf32> to vector<16x1xf32>
    %37 = tpu.reciprocal %36 {approx = true} : vector<16x1xf32> -> vector<16x1xf32>
    %38 = vector.broadcast %37 : vector<16x1xf32> to vector<16x16xf32>
    %39 = arith.mulf %34, %38 : vector<16x16xf32>
    %cst_14 = arith.constant dense<0.000000e+00> : vector<16x16xf32>
    %40 = tpu.matmul %39, %25, %cst_14 {dimension_numbers = #tpu.dot_dimension_numbers<[1], [0], [0], [1], [0, 0, 1, 1], [], []>} : vector<16x16xf32>, vector<16x16xf32>, vector<16x16xf32> -> vector<16x16xf32>
    %41 = vector.extract_strided_slice %21 {offsets = [0, 0], sizes = [16, 32], strides = [1, 1]} : vector<32x32xf32> to vector<16x32xf32>
    %cst_15 = arith.constant dense<0.000000e+00> : vector<16x32xf32>
    %42 = tpu.matmul %40, %41, %cst_15 {dimension_numbers = #tpu.dot_dimension_numbers<[1], [0], [0], [1], [0, 0, 1, 1], [], []>} : vector<16x16xf32>, vector<16x32xf32>, vector<16x32xf32> -> vector<16x32xf32>
    %43 = arith.addf %22, %42 : vector<16x32xf32>
    %44 = vector.extract_strided_slice %18 {offsets = [0, 16], sizes = [16, 16], strides = [1, 1]} : vector<16x32xf32> to vector<16x16xf32>
    %45 = vector.extract_strided_slice %19 {offsets = [0, 16], sizes = [16, 16], strides = [1, 1]} : vector<16x32xf32> to vector<16x16xf32>
    %46 = vector.extract_strided_slice %20 {offsets = [0, 16], sizes = [16, 16], strides = [1, 1]} : vector<16x32xf32> to vector<16x16xf32>
    %cst_16 = arith.constant dense<0.000000e+00> : vector<16x16xf32>
    %47 = tpu.matmul %44, %45, %cst_16 {dimension_numbers = #tpu.dot_dimension_numbers<[1], [1], [0], [0], [0, 0, 1, 0], [], []>} : vector<16x16xf32>, vector<16x16xf32>, vector<16x16xf32> -> vector<16x16xf32>
    %cst_17 = arith.constant 2.500000e-01 : f32
    %48 = vector.broadcast %cst_17 : f32 to vector<16x16xf32>
    %49 = arith.mulf %47, %48 : vector<16x16xf32>
    %50 = arith.addf %49, %2 : vector<16x16xf32>
    %cst_18 = arith.constant dense<0xFF800000> : vector<16xf32>
    %51 = vector.multi_reduction <maximumf>, %50, %cst_18 [1] : vector<16x16xf32> to vector<16xf32>
    %52 = vector.shape_cast %51 : vector<16xf32> to vector<16x1xf32>
    %53 = vector.broadcast %52 : vector<16x1xf32> to vector<16x16xf32>
    %54 = arith.subf %50, %53 : vector<16x16xf32>
    %55 = math.exp %54 : vector<16x16xf32>
    %cst_19 = arith.constant dense<0.000000e+00> : vector<16xf32>
    %56 = vector.multi_reduction <add>, %55, %cst_19 [1] : vector<16x16xf32> to vector<16xf32>
    %57 = vector.shape_cast %56 : vector<16xf32> to vector<16x1xf32>
    %58 = tpu.reciprocal %57 {approx = true} : vector<16x1xf32> -> vector<16x1xf32>
    %59 = vector.broadcast %58 : vector<16x1xf32> to vector<16x16xf32>
    %60 = arith.mulf %55, %59 : vector<16x16xf32>
    %cst_20 = arith.constant dense<0.000000e+00> : vector<16x16xf32>
    %61 = tpu.matmul %60, %46, %cst_20 {dimension_numbers = #tpu.dot_dimension_numbers<[1], [0], [0], [1], [0, 0, 1, 1], [], []>} : vector<16x16xf32>, vector<16x16xf32>, vector<16x16xf32> -> vector<16x16xf32>
    %62 = vector.extract_strided_slice %21 {offsets = [16, 0], sizes = [16, 32], strides = [1, 1]} : vector<32x32xf32> to vector<16x32xf32>
    %cst_21 = arith.constant dense<0.000000e+00> : vector<16x32xf32>
    %63 = tpu.matmul %61, %62, %cst_21 {dimension_numbers = #tpu.dot_dimension_numbers<[1], [0], [0], [1], [0, 0, 1, 1], [], []>} : vector<16x16xf32>, vector<16x32xf32>, vector<16x32xf32> -> vector<16x32xf32>
    %64 = arith.addf %43, %63 : vector<16x32xf32>
    %65 = vector.broadcast %6 : vector<1x32xf32> to vector<16x32xf32>
    %66 = arith.addf %64, %65 : vector<16x32xf32>
    %67 = arith.addf %0, %66 : vector<16x32xf32>
    %cst_22 = arith.constant dense<0.000000e+00> : vector<16xf32>
    %68 = vector.multi_reduction <add>, %67, %cst_22 [1] : vector<16x32xf32> to vector<16xf32>
    %69 = vector.shape_cast %68 : vector<16xf32> to vector<16x1xf32>
    %cst_23 = arith.constant 3.200000e+01 : f32
    %70 = vector.broadcast %cst_23 : f32 to vector<16x1xf32>
    %71 = arith.divf %69, %70 : vector<16x1xf32>
    %72 = vector.broadcast %71 : vector<16x1xf32> to vector<16x32xf32>
    %73 = arith.subf %67, %72 : vector<16x32xf32>
    %74 = arith.mulf %73, %73 : vector<16x32xf32>
    %cst_24 = arith.constant dense<0.000000e+00> : vector<16xf32>
    %75 = vector.multi_reduction <add>, %74, %cst_24 [1] : vector<16x32xf32> to vector<16xf32>
    %76 = vector.shape_cast %75 : vector<16xf32> to vector<16x1xf32>
    %cst_25 = arith.constant 3.200000e+01 : f32
    %77 = vector.broadcast %cst_25 : f32 to vector<16x1xf32>
    %78 = arith.divf %76, %77 : vector<16x1xf32>
    %79 = vector.broadcast %71 : vector<16x1xf32> to vector<16x32xf32>
    %80 = arith.subf %67, %79 : vector<16x32xf32>
    %cst_26 = arith.constant 9.99999996E-13 : f32
    %81 = vector.broadcast %cst_26 : f32 to vector<16x1xf32>
    %82 = arith.addf %78, %81 : vector<16x1xf32>
    %83 = math.rsqrt %82 : vector<16x1xf32>
    %84 = vector.broadcast %83 : vector<16x1xf32> to vector<16x32xf32>
    %85 = arith.mulf %80, %84 : vector<16x32xf32>
    %86 = vector.broadcast %7 : vector<1x32xf32> to vector<16x32xf32>
    %87 = arith.mulf %85, %86 : vector<16x32xf32>
    %88 = vector.broadcast %8 : vector<1x32xf32> to vector<16x32xf32>
    %89 = arith.addf %87, %88 : vector<16x32xf32>
    %c0_27 = arith.constant 0 : index
    %c0_28 = arith.constant 0 : index
    %90 = vector.load %arg5[%c0_27, %c0_28] : memref<32x64xf32, #tpu.memory_space<vmem>>, vector<32x64xf32>
    %cst_29 = arith.constant dense<0.000000e+00> : vector<16x64xf32>
    %91 = tpu.matmul %89, %90, %cst_29 {dimension_numbers = #tpu.dot_dimension_numbers<[1], [0], [0], [1], [0, 0, 1, 1], [], []>} : vector<16x32xf32>, vector<32x64xf32>, vector<16x64xf32> -> vector<16x64xf32>
    %92 = vector.broadcast %9 : vector<1x64xf32> to vector<16x64xf32>
    %93 = arith.addf %91, %92 : vector<16x64xf32>
    %94 = arith.mulf %93, %93 : vector<16x64xf32>
    %95 = arith.mulf %93, %94 : vector<16x64xf32>
    %cst_30 = arith.constant 4.471500e-02 : f32
    %96 = vector.broadcast %cst_30 : f32 to vector<16x64xf32>
    %97 = arith.mulf %96, %95 : vector<16x64xf32>
    %98 = arith.addf %93, %97 : vector<16x64xf32>
    %cst_31 = arith.constant 0.797884583 : f32
    %99 = vector.broadcast %cst_31 : f32 to vector<16x64xf32>
    %100 = arith.mulf %99, %98 : vector<16x64xf32>
    %101 = math.tanh %100 : vector<16x64xf32>
    %cst_32 = arith.constant 1.000000e+00 : f32
    %102 = vector.broadcast %cst_32 : f32 to vector<16x64xf32>
    %103 = arith.addf %102, %101 : vector<16x64xf32>
    %cst_33 = arith.constant 5.000000e-01 : f32
    %104 = vector.broadcast %cst_33 : f32 to vector<16x64xf32>
    %105 = arith.mulf %104, %103 : vector<16x64xf32>
    %106 = arith.mulf %93, %105 : vector<16x64xf32>
    %c0_34 = arith.constant 0 : index
    %c0_35 = arith.constant 0 : index
    %107 = vector.load %arg6[%c0_34, %c0_35] : memref<64x32xf32, #tpu.memory_space<vmem>>, vector<64x32xf32>
    %cst_36 = arith.constant dense<0.000000e+00> : vector<16x32xf32>
    %108 = tpu.matmul %106, %107, %cst_36 {dimension_numbers = #tpu.dot_dimension_numbers<[1], [0], [0], [1], [0, 0, 1, 1], [], []>} : vector<16x64xf32>, vector<64x32xf32>, vector<16x32xf32> -> vector<16x32xf32>
    %109 = vector.broadcast %10 : vector<1x32xf32> to vector<16x32xf32>
    %110 = arith.addf %108, %109 : vector<16x32xf32>
    %111 = arith.addf %89, %110 : vector<16x32xf32>
    %cst_37 = arith.constant dense<0.000000e+00> : vector<16xf32>
    %112 = vector.multi_reduction <add>, %111, %cst_37 [1] : vector<16x32xf32> to vector<16xf32>
    %113 = vector.shape_cast %112 : vector<16xf32> to vector<16x1xf32>
    %cst_38 = arith.constant 3.200000e+01 : f32
    %114 = vector.broadcast %cst_38 : f32 to vector<16x1xf32>
    %115 = arith.divf %113, %114 : vector<16x1xf32>
    %116 = vector.broadcast %115 : vector<16x1xf32> to vector<16x32xf32>
    %117 = arith.subf %111, %116 : vector<16x32xf32>
    %118 = arith.mulf %117, %117 : vector<16x32xf32>
    %cst_39 = arith.constant dense<0.000000e+00> : vector<16xf32>
    %119 = vector.multi_reduction <add>, %118, %cst_39 [1] : vector<16x32xf32> to vector<16xf32>
    %120 = vector.shape_cast %119 : vector<16xf32> to vector<16x1xf32>
    %cst_40 = arith.constant 3.200000e+01 : f32
    %121 = vector.broadcast %cst_40 : f32 to vector<16x1xf32>
    %122 = arith.divf %120, %121 : vector<16x1xf32>
    %123 = vector.broadcast %115 : vector<16x1xf32> to vector<16x32xf32>
    %124 = arith.subf %111, %123 : vector<16x32xf32>
    %cst_41 = arith.constant 9.99999996E-13 : f32
    %125 = vector.broadcast %cst_41 : f32 to vector<16x1xf32>
    %126 = arith.addf %122, %125 : vector<16x1xf32>
    %127 = math.rsqrt %126 : vector<16x1xf32>
    %128 = vector.broadcast %127 : vector<16x1xf32> to vector<16x32xf32>
    %129 = arith.mulf %124, %128 : vector<16x32xf32>
    %130 = vector.broadcast %11 : vector<1x32xf32> to vector<16x32xf32>
    %131 = arith.mulf %129, %130 : vector<16x32xf32>
    %132 = vector.broadcast %12 : vector<1x32xf32> to vector<16x32xf32>
    %133 = arith.addf %131, %132 : vector<16x32xf32>
    %c0_42 = arith.constant 0 : index
    %c0_43 = arith.constant 0 : index
    %134 = vector.load %arg7[%c0_42, %c0_43] : memref<32x128xf32, #tpu.memory_space<vmem>>, vector<32x128xf32>
    %cst_44 = arith.constant dense<0.000000e+00> : vector<16x128xf32>
    %135 = tpu.matmul %133, %134, %cst_44 {dimension_numbers = #tpu.dot_dimension_numbers<[1], [0], [0], [1], [0, 0, 1, 1], [], []>} : vector<16x32xf32>, vector<32x128xf32>, vector<16x128xf32> -> vector<16x128xf32>
    %136 = vector.broadcast %13 : vector<1x128xf32> to vector<16x128xf32>
    %137 = arith.addf %135, %136 : vector<16x128xf32>
    %cst_45 = arith.constant 0.000000e+00 : f32
    %138 = vector.broadcast %cst_45 : f32 to vector<16x1xf32>
    %139 = arith.cmpf oeq, %3, %138 : vector<16x1xf32>
    %cst_46 = arith.constant 0xFF800000 : f32
    %140 = vector.shape_cast %139 : vector<16x1xi1> to vector<16x1xi1>
    %141 = vector.broadcast %140 : vector<16x1xi1> to vector<16x128xi1>
    %142 = vector.broadcast %cst_46 : f32 to vector<16x128xf32>
    %143 = arith.select %141, %142, %137 : vector<16x128xi1>, vector<16x128xf32>
    %144 = vector.extract_strided_slice %143 {offsets = [0, 0], sizes = [8, 128], strides = [1, 1]} : vector<16x128xf32> to vector<8x128xf32>
    %cst_47 = arith.constant dense<0xFF800000> : vector<128xf32>
    %145 = vector.multi_reduction <maximumf>, %144, %cst_47 [0] : vector<8x128xf32> to vector<128xf32>
    %146 = vector.shape_cast %145 : vector<128xf32> to vector<1x128xf32>
    %147 = vector.broadcast %146 : vector<1x128xf32> to vector<8x128xf32>
    %148 = arith.subf %144, %147 : vector<8x128xf32>
    %149 = math.exp %148 : vector<8x128xf32>
    %cst_48 = arith.constant dense<0.000000e+00> : vector<128xf32>
    %150 = vector.multi_reduction <add>, %149, %cst_48 [0] : vector<8x128xf32> to vector<128xf32>
    %151 = vector.shape_cast %150 : vector<128xf32> to vector<1x128xf32>
    %152 = vector.broadcast %151 : vector<1x128xf32> to vector<8x128xf32>
    %153 = arith.divf %149, %152 : vector<8x128xf32>
    %c0_49 = arith.constant 0 : index
    %c0_50 = arith.constant 0 : index
    %154 = vector.load %arg9[%c0_49, %c0_50] : memref<16x128xf32, #tpu.memory_space<vmem>>, vector<8x128xf32>
    tpu.vector_store %arg9[%c0_49, %c0_50], %153 {strides = array<i32>} : memref<16x128xf32, #tpu.memory_space<vmem>>, vector<8x128xf32>,
    %155 = vector.extract_strided_slice %143 {offsets = [8, 0], sizes = [8, 128], strides = [1, 1]} : vector<16x128xf32> to vector<8x128xf32>
    %cst_51 = arith.constant dense<0xFF800000> : vector<128xf32>
    %156 = vector.multi_reduction <maximumf>, %155, %cst_51 [0] : vector<8x128xf32> to vector<128xf32>
    %157 = vector.shape_cast %156 : vector<128xf32> to vector<1x128xf32>
    %158 = vector.broadcast %157 : vector<1x128xf32> to vector<8x128xf32>
    %159 = arith.subf %155, %158 : vector<8x128xf32>
    %160 = math.exp %159 : vector<8x128xf32>
    %cst_52 = arith.constant dense<0.000000e+00> : vector<128xf32>
    %161 = vector.multi_reduction <add>, %160, %cst_52 [0] : vector<8x128xf32> to vector<128xf32>
    %162 = vector.shape_cast %161 : vector<128xf32> to vector<1x128xf32>
    %163 = vector.broadcast %162 : vector<1x128xf32> to vector<8x128xf32>
    %164 = arith.divf %160, %163 : vector<8x128xf32>
    %c8 = arith.constant 8 : index
    %c0_53 = arith.constant 0 : index
    %165 = vector.load %arg9[%c8, %c0_53] : memref<16x128xf32, #tpu.memory_space<vmem>>, vector<8x128xf32>
    tpu.vector_store %arg9[%c8, %c0_53], %164 {strides = array<i32>} : memref<16x128xf32, #tpu.memory_space<vmem>>, vector<8x128xf32>,
    return
  }
  func.func @transform_0(%arg0: i32) -> (i32, i32) {
    %c0_i32 = arith.constant 0 : i32
    %c0_i32_0 = arith.constant 0 : i32
    %c0_i32_1 = arith.constant 0 : i32
    return %c0_i32, %c0_i32_0 : i32, i32
  }
  func.func @transform_1(%arg0: i32) -> (i32, i32) {
    %c0_i32 = arith.constant 0 : i32
    %c0_i32_0 = arith.constant 0 : i32
    %c0_i32_1 = arith.constant 0 : i32
    return %c0_i32, %c0_i32_0 : i32, i32
  }
  func.func @transform_2(%arg0: i32) -> (i32, i32) {
    %c0_i32 = arith.constant 0 : i32
    %c0_i32_0 = arith.constant 0 : i32
    %c0_i32_1 = arith.constant 0 : i32
    return %c0_i32, %c0_i32_0 : i32, i32
  }
  func.func @transform_3(%arg0: i32) -> (i32, i32) {
    %c0_i32 = arith.constant 0 : i32
    %c0_i32_0 = arith.constant 0 : i32
    %c0_i32_1 = arith.constant 0 : i32
    return %c0_i32, %c0_i32_0 : i32, i32
  }
  func.func @transform_4(%arg0: i32) -> (i32, i32) {
    %c0_i32 = arith.constant 0 : i32
    %c0_i32_0 = arith.constant 0 : i32
    %c0_i32_1 = arith.constant 0 : i32
    return %c0_i32, %c0_i32_0 : i32, i32
  }
  func.func @transform_5(%arg0: i32) -> (i32, i32) {
    %c0_i32 = arith.constant 0 : i32
    %c0_i32_0 = arith.constant 0 : i32
    %c0_i32_1 = arith.constant 0 : i32
    return %c0_i32, %c0_i32_0 : i32, i32
  }
  func.func @transform_6(%arg0: i32) -> (i32, i32) {
    %c0_i32 = arith.constant 0 : i32
    %c0_i32_0 = arith.constant 0 : i32
    %c0_i32_1 = arith.constant 0 : i32
    return %c0_i32, %c0_i32_0 : i32, i32
  }
  func.func @transform_7(%arg0: i32) -> (i32, i32) {
    %c0_i32 = arith.constant 0 : i32
    %c0_i32_0 = arith.constant 0 : i32
    %c0_i32_1 = arith.constant 0 : i32
    return %c0_i32, %c0_i32_0 : i32, i32
  }
  func.func @transform_8(%arg0: i32) -> (i32, i32) {
    %c0_i32 = arith.constant 0 : i32
    %c0_i32_0 = arith.constant 0 : i32
    %c0_i32_1 = arith.constant 0 : i32
    return %c0_i32, %c0_i32_0 : i32, i32
  }
}

</mosaic_0001>

<bundles_post_ra>
// kernel: tpu_custom_call.1
= control target key start
LH: loop header
LB: loop body
LE: loop exit
PB: predicated region body
PF: predicated region fallthrough
CT: control target
= control target key end

     0   :  { %13 = vsyncpa [#allocation3], 0  ;;  %s1877_s0 = inlined_call_operand.hbm [shape: f32[16,32], index: 0, kind: input, shape index: {}]   ;;  %s1878_s1 = inlined_call_operand.hbm [shape: f32[16,128], index: 1, kind: input, shape index: {}]   ;;  %s1879_s2 = inlined_call_operand.vmem [shape: f32[32,96], index: 2, kind: input, shape index: {}]   ;;  %s1880_s3 = inlined_call_operand.vmem [shape: f32[32,32], index: 3, kind: input, shape index: {}]   ;;  %s1881_s4 = inlined_call_operand.vmem [shape: f32[32,64], index: 4, kind: input, shape index: {}]   ;;  %s1882_s5 = inlined_call_operand.vmem [shape: f32[64,32], index: 5, kind: input, shape index: {}]   ;;  %s1883_s6 = inlined_call_operand.hbm [shape: f32[32,128], index: 6, kind: input, shape index: {}]   ;;  %s1884_s7 = inlined_call_operand.vmem [shape: f32[16,128], index: 7, kind: input, shape index: {}]   ;;  %s1885_s8 = inlined_call_operand.hbm [shape: f32[16,128], index: 8, kind: output, shape index: {}]  }
   0x1   :  { %14 = vsyncpa [#allocation6], 0 }
   0x2   :  { %15 = vsyncpa [#allocation4], 0  ;;  %s1590_s27 = smov [#allocation5]   ;;  %s1591_s29 = smov [#allocation2]  }
   0x3   :  { %s33_s28 = sshll.u32 %s1590_s27, 4  ;;  %s21_s30 = sshll.u32 %s1591_s29, 4  ;;  %s34_s28 = int_to_ptr.vmem [resolvable:$true] %s33_s28  ;;  %s1648_s30 = int_to_ptr.vmem [resolvable:$true] %s21_s30 }
   0x4   :  { %s1496_s11 = scalar_lea.hbm %s1878_s1, 256 }
   0x5   :  { %p1497_p0 = scmp.ne.s32.totalorder %s1878_s1, %s1496_s11  ;;  %p1500_p1 = scmp.lt.u32.totalorder %s1496_s11, %s1878_s1 }
   0x7   :  { %p1502_p2 = pnand %p1500_p1, %p1497_p0 }
   0x9   :  { %1505 = shalt.err (!%p1502_p2)
}
   0xa   :  { %s1506_s16 = scalar_lea.vmem %s34_s28, 256  ;;  %p1511_p4 = scmp.lt.s32.totalorder %s34_s28, %s34_s28 }
   0xb   :  { %p1507_p3 = scmp.ne.s32.totalorder %s34_s28, %s1506_s16  ;;  %p1512_p5 = scmp.lt.s32.totalorder %s1506_s16, %s1506_s16 }
   0xd   :  { %p1513_p6 = por %p1512_p5, %p1511_p4 }
   0xf   :  { %p1514_p7 = pnand %p1513_p6, %p1507_p3 }
  0x11   :  { %1517 = shalt.err (!%p1514_p7)
}
  0x12   :  { %s1592_s17 = smov 128   ;;  %s1593_s18 = smov 8  }
  0x13   :  { %39 = dma.hbm_to_vmem [thread:$0]  %s1878_s1, 256, %s34_s28, [#allocation6], %s1592_s17, %s1592_s17, %s1593_s18  }
  0x14   :  { %s1518_s23 = scalar_lea.hbm %s1877_s0, 256 }
  0x15   :  { %p1519_p8 = scmp.ne.s32.totalorder %s1877_s0, %s1518_s23  ;;  %p1522_p9 = scmp.lt.u32.totalorder %s1518_s23, %s1877_s0 }
  0x17   :  { %p1524_p10 = pnand %p1522_p9, %p1519_p8 }
  0x19   :  { %1527 = shalt.err (!%p1524_p10)
}
  0x1a   :  { %s1528_s29 = scalar_lea.vmem %s1648_s30, 256  ;;  %p1533_p12 = scmp.lt.s32.totalorder %s1648_s30, %s1648_s30 }
  0x1b   :  { %p1529_p11 = scmp.ne.s32.totalorder %s1648_s30, %s1528_s29  ;;  %p1534_p13 = scmp.lt.s32.totalorder %s1528_s29, %s1528_s29 }
  0x1d   :  { %p1535_p0 = por %p1534_p13, %p1533_p12 }
  0x1f   :  { %p1536_p1 = pnand %p1535_p0, %p1529_p11 }
  0x21   :  { %1539 = shalt.err (!%p1536_p1)
}
  0x22   :  { %27 = dma.hbm_to_vmem [thread:$0]  %s1877_s0, 256, %s1648_s30, [#allocation3], %s1592_s17, %s1592_s17, %s1593_s18  }
  0x23   :  { %s1594_s9 = smov [#allocation7]   ;;  %s1540_s13 = scalar_lea.hbm %s1883_s6, 512 }
  0x24   :  { %s53_s10 = sshll.u32 %s1594_s9, 4  ;;  %p1541_p2 = scmp.ne.s32.totalorder %s1883_s6, %s1540_s13  ;;  %s54_s10 = int_to_ptr.vmem [resolvable:$true] %s53_s10 }
  0x25   :  { %p1544_p3 = scmp.lt.u32.totalorder %s1540_s13, %s1883_s6 }
  0x27   :  { %p1546_p4 = pnand %p1544_p3, %p1541_p2 }
  0x29   :  { %1549 = shalt.err (!%p1546_p4)
}
  0x2a   :  { %s1550_s20 = scalar_lea.vmem %s54_s10, 512  ;;  %p1555_p6 = scmp.lt.s32.totalorder %s54_s10, %s54_s10 }
  0x2b   :  { %p1551_p5 = scmp.ne.s32.totalorder %s54_s10, %s1550_s20  ;;  %p1556_p7 = scmp.lt.s32.totalorder %s1550_s20, %s1550_s20 }
  0x2d   :  { %p1557_p8 = por %p1556_p7, %p1555_p6 }
  0x2f   :  { %p1558_p9 = pnand %p1557_p8, %p1551_p5 }
  0x31   :  { %1561 = shalt.err (!%p1558_p9)
}
  0x32   :  { %59 = dma.hbm_to_vmem [thread:$0]  %s1883_s6, 512, %s54_s10, [#allocation6], %s1592_s17, %s1592_s17, %s1593_s18  }
  0x33   :  { %1584 = dma.done.wait [#allocation3], 256  }
  0x34   :  { %1585 = vsyncadd [#allocation3], 4294967040 }
  0x35   :  { %1586 = dma.done.wait [#allocation6], 768  }
  0x36   :  { %1587 = vsyncadd [#allocation6], 4294966528  ;;  %vm85_vm0 = vcmask 261120   ;;  %v77_v0 = vld [vmem:[%s1879_s2] sm:$0xff]  ;;  %v78_v1 = vld [vmem:[%s1879_s2 + $0x8] sm:$0xff]  ;;  %v81_v8 = vlaneseq  ;;  %vm177_vm1 = vcmask 130048  }
  0x37   :  { %v79_v2 = vld [vmem:[%s1879_s2 + $0x10] sm:$0xff]  ;;  %v1355_v3 = vpack.c.bf16 %v78_v1, %v77_v0  ;;  %v80_v4 = vld [vmem:[%s1879_s2 + $0x18] sm:$0xff]  ;;  %v1712_v5 = vld [vmem:[#allocation2] sm:$0xff]  ;;  %s1595_s1 = smov 96   ;;  %s1596_s28 = smov 64   ;;  %vm906_vm3 = vcmask 523264  }
  0x38   :  { %v1359_v6 = vpack.c.bf16 %v80_v4, %v79_v2  ;;  %1269 = vmatprep.mubr.msk.f32.mxu0 %vm85_vm0, %v1712_v5  ;;  %v1716_v7 = vld [vmem:[#allocation2 + $0x8] sm:$0xff]  ;;  %v1720_v9 = vshrl.u32 %v81_v8, 7  ;;  %v1726_v11 = vld [vmem:[%s1884_s7] sm:$0xff]  ;;  %vm1737_vm2 = vmpackc.low %vm177_vm1, %vm177_vm1  ;;  %s1597_s9 = smov 80   ;;  %s1598_s10 = smov 112  }
  0x39   :  { %1356 = vmatprep.subr.bf16.mxu0 %v1355_v3  ;;  %v1746_v24 = vld [vmem:[#allocation5 + $0x8] sm:$0xff]  ;;  %v1748_v27 = vld [vmem:[#allocation5] sm:$0xff]  ;;  %s1599_s11 = smov 48  }
  0x3a   :  { %1358 = vmatpush3.bf16.msra.mxu0 %v1355_v3  ;;  %v83_v10 = vsub.s32 0, %v1720_v9  ;;  %vm1118_vm4 = vcmp.eq.f32.partialorder %v1746_v24, 0.0  ;;  %vm1117_vm5 = vcmp.eq.f32.partialorder %v1748_v27, 0.0 }
  0x3b   :  { %1360 = vmatprep.subr.bf16.mxu0 %v1359_v6 }
  0x3c   :  { %v84_v12 = vrot.slane %v1726_v11, %v83_v10 }
  0x3e   :  { %1362 = vmatpush3.bf16.msra.mxu0 %v1359_v6 }
  0x41   :  { %1270 = vmatmul.mubr.msk.f32.vlgmr.msra.gmra.mrb[0].mxu0 %vm85_vm0, %v1716_v7 }
 0x114   :  { %v1271_v13 = vpop.f32.mrb[0].mxu0 }
 0x115   :  { %v164_v14 = vadd.f32 %v1271_v13, %v84_v12  ;;  %v158_v15 = vpop.f32.mrb[1].mxu0 }
 0x116   :  { %v159_v16 = vadd.f32 %v158_v15, %v84_v12 }
 0x118   :  { %1276 = vmatprep.mubr.msk.f32.mxu1 %vm177_vm1, %v159_v16  ;;  %v1732_v17 = vpack.i.bf16 %v164_v14, %v159_v16 }
 0x11a   :  { %1439 = vrot.lane.b32.xlu0 %v1732_v17, %s1595_s1 }
 0x18c   :  { %v1440_v18 = vpop.permute.xlu0 %1439 }
 0x18d   :  { %v1442_v19 = vunpack.i.h.bf16 %v1440_v18  ;;  %v1441_v20 = vunpack.i.l.bf16 %v1440_v18 }
 0x18f   :  { %v1363_v22 = vpack.c.bf16 %v1442_v19, %v1441_v20 }
 0x191   :  { %1365 = vmatprep.subr.msk.bf16.mxu1 %vm1737_vm2, %v1363_v22 }
 0x192   :  { %1368 = vmatpush3.bf16.xpose.msk.msra.mxu1 %vm1737_vm2, %v1363_v22 }
 0x199   :  { %1277 = vmatmul.mubr.msk.f32.vlgmr.msra.gmra.mrb[0].mxu1 %vm177_vm1, %v164_v14 }
 0x26c   :  { %v1278_v23 = vpop.f32.mrb[0].mxu1 }
 0x26d   :  { %v262_v25 = vmul.f32 0.25, %v1278_v23  ;;  %v252_v26 = vpop.f32.mrb[1].mxu1 }
 0x26e   :  { %v261_v28 = vmul.f32 0.25, %v252_v26  ;;  %v170_v26 = vld [vmem:[%s1880_s3 + $0x18] sm:$0xff] }
 0x26f   :  { %v264_v29 = vadd.f32 %v262_v25, %v1746_v24  ;;  %v169_v25 = vld [vmem:[%s1880_s3 + $0x10] sm:$0xff] }
 0x270   :  { %v263_v30 = vadd.f32 %v261_v28, %v1748_v27 }
 0x271   :  { %v268_v31 = vsel %vm177_vm1, %v264_v29, -inf }
 0x272   :  { %269 = vmax.xlane.f32.xlu1 %v268_v31  ;;  %v265_v32 = vsel %vm177_vm1, %v263_v30, -inf  ;;  %v1383_v31 = vpack.c.bf16 %v170_v26, %v169_v25  ;;  %v894_v25 = vld [vmem:[%s1882_s5] sm:$0xff]  ;;  %v895_v26 = vld [vmem:[%s1882_s5 + $0x8] sm:$0xff] }
 0x273   :  { %266 = vmax.xlane.f32.xlu0 %v265_v32 }
 0x283   :  { %1444 = vrot.lane.b32.xlu1 %v1732_v17, %s1596_s28 }
 0x287   :  { %1449 = vrot.lane.b32.xlu1 %v1732_v17, %s1597_s9 }
 0x289   :  { %376 = vrot.lane.b32.xlu0 %v164_v14, %s1598_s10 }
 0x2ff   :  { %v270_v33 = vpop.xlane.xlu1 %269 }
 0x300   :  { %v272_v34 = vsub.f32 %v264_v29, %v270_v33  ;;  %v267_v35 = vpop.xlane.xlu0 %266 }
 0x301   :  { %v271_v36 = vsub.f32 %v263_v30, %v267_v35  ;;  %v167_v35 = vld [vmem:[%s1880_s3] sm:$0xff] }
 0x302   :  { %v275_v37 = vmul.f32 1.442695, %v272_v34 }
 0x303   :  { %v273_v38 = vmul.f32 1.442695, %v271_v36  ;;  %v1445_v39 = vpop.permute.xlu1 %1444  ;;  %v168_v36 = vld [vmem:[%s1880_s3 + $0x8] sm:$0xff] }
 0x304   :  { %1460 = vpow2.f32 %v275_v37  ;;  %v1447_v40 = vunpack.i.h.bf16 %v1445_v39  ;;  %v1446_v41 = vunpack.i.l.bf16 %v1445_v39  ;;  %v377_v58 = vpop.permute.xlu0 %376  ;;  %v1387_v37 = vpack.c.bf16 %v168_v36, %v167_v35  ;;  %v901_v35 = vld [vmem:[%s1882_s5 + $0x38] sm:$0xff] }
 0x305   :  { %1462 = vpow2.f32 %v273_v38 }
 0x306   :  { %v1369_v42 = vpack.c.bf16 %v1447_v40, %v1446_v41  ;;  %v742_v40 = vsub.s32 1, %v1720_v9 }
 0x307   :  { %v1450_v43 = vpop.permute.xlu1 %1449 }
 0x308   :  { %v1452_v44 = vunpack.i.h.bf16 %v1450_v43  ;;  %v1451_v45 = vunpack.i.l.bf16 %v1450_v43  ;;  %1370 = vmatprep.subr.bf16.mxu1 %v1369_v42  ;;  %v743_v41 = vrot.slane %v1726_v11, %v742_v40 }
 0x309   :  { %1372 = vmatpush3.bf16.msra.mxu1 %v1369_v42 }
 0x30a   :  { %v1373_v46 = vpack.c.bf16 %v1452_v44, %v1451_v45 }
 0x30c   :  { %1375 = vmatprep.subr.msk.bf16.mxu1 %vm1737_vm2, %v1373_v46 }
 0x30e   :  { %v1461_v47 = vpop.eup %1460 }
 0x30f   :  { %v280_v48 = vsel %vm177_vm1, %v1461_v47, 0.0  ;;  %v1463_v49 = vpop.eup %1462 }
 0x310   :  { %281 = vadd.xlane.f32.xlu1 %v280_v48  ;;  %v277_v50 = vsel %vm177_vm1, %v1463_v49, 0.0 }
 0x314   :  { %278 = vadd.xlane.f32.xlu1 %v277_v50 }
 0x325   :  { %374 = vrot.lane.b32.xlu1 %v159_v16, %s1598_s10 }
 0x39d   :  { %v282_v51 = vpop.xlane.xlu1 %281 }
 0x39e   :  { %1464 = vrcp.f32 %v282_v51 }
 0x3a1   :  { %v279_v52 = vpop.xlane.xlu1 %278 }
 0x3a2   :  { %1466 = vrcp.f32 %v279_v52 }
 0x3a5   :  { %v375_v57 = vpop.permute.xlu1 %374 }
 0x3a8   :  { %v1465_v53 = vpop.eup %1464 }
 0x3a9   :  { %v286_v56 = vmul.f32 %v1465_v53, %v1461_v47 }
 0x3ac   :  { %v1467_v54 = vpop.eup %1466 }
 0x3ad   :  { %v285_v55 = vmul.f32 %v1467_v54, %v1463_v49 }
 0x3af   :  { %1283 = vmatprep.mubr.msk.f32.mxu1 %vm177_vm1, %v285_v55 }
 0x3b0   :  { %1284 = vmatmul.mubr.msk.f32.vlgmr.msra.gmra.mrb[2].mxu1 %vm177_vm1, %v286_v56 }
 0x3b1   :  { %1378 = vmatpush3.bf16.xpose.msk.msra.mxu1 %vm1737_vm2, %v1373_v46  ;;  %1290 = vmatprep.mubr.msk.f32.mxu1 %vm177_vm1, %v375_v57 }
 0x3b8   :  { %1291 = vmatmul.mubr.msk.f32.vlgmr.msra.gmra.mrb[4].mxu1 %vm177_vm1, %v377_v58 }
 0x483   :  { %v1285_v59 = vpop.f32.mrb[2].mxu1 }
 0x484   :  { %v365_v60 = vpop.f32.mrb[3].mxu1 }
 0x48b   :  { %v1292_v61 = vpop.f32.mrb[4].mxu1 }
 0x48c   :  { %v466_v62 = vmul.f32 0.25, %v1292_v61  ;;  %v456_v63 = vpop.f32.mrb[5].mxu1  ;;  %v789_v61 = vld [vmem:[%s1881_s4 + $0x10] sm:$0xff] }
 0x48d   :  { %v465_v0 = vmul.f32 0.25, %v456_v63 }
 0x48e   :  { %v468_v1 = vadd.f32 %v466_v62, %v1746_v24  ;;  %v790_v62 = vld [vmem:[%s1881_s4 + $0x18] sm:$0xff]  ;;  %v1018_v24 = vsub.s32 6, %v1720_v9 }
 0x48f   :  { %v467_v2 = vadd.f32 %v465_v0, %v1748_v27  ;;  %v1395_v63 = vpack.c.bf16 %v790_v62, %v789_v61  ;;  %v1024_v27 = vsub.s32 7, %v1720_v9 }
 0x490   :  { %v472_v3 = vsel %vm177_vm1, %v468_v1, -inf }
 0x491   :  { %473 = vmax.xlane.f32.xlu0 %v472_v3  ;;  %v469_v4 = vsel %vm177_vm1, %v467_v2, -inf }
 0x492   :  { %470 = vmax.xlane.f32.xlu1 %v469_v4 }
 0x51e   :  { %v474_v6 = vpop.xlane.xlu0 %473 }
 0x51f   :  { %v476_v8 = vsub.f32 %v468_v1, %v474_v6  ;;  %v471_v12 = vpop.xlane.xlu1 %470 }
 0x520   :  { %v475_v13 = vsub.f32 %v467_v2, %v471_v12  ;;  %v783_v12 = vsub.s32 3, %v1720_v9 }
 0x521   :  { %v479_v14 = vmul.f32 1.442695, %v476_v8  ;;  %v777_v8 = vsub.s32 2, %v1720_v9 }
 0x522   :  { %v477_v15 = vmul.f32 1.442695, %v475_v13 }
 0x523   :  { %1468 = vpow2.f32 %v479_v14  ;;  %v778_v13 = vrot.slane %v1726_v11, %v777_v8 }
 0x524   :  { %1470 = vpow2.f32 %v477_v15 }
 0x52d   :  { %v1469_v16 = vpop.eup %1468 }
 0x52e   :  { %v484_v18 = vsel %vm177_vm1, %v1469_v16, 0.0  ;;  %v1471_v19 = vpop.eup %1470 }
 0x52f   :  { %485 = vadd.xlane.f32.xlu1 %v484_v18  ;;  %v481_v20 = vsel %vm177_vm1, %v1471_v19, 0.0 }
 0x533   :  { %482 = vadd.xlane.f32.xlu1 %v481_v20 }
 0x544   :  { %1454 = vrot.lane.b32.xlu1 %v1732_v17, %s1599_s11 }
 0x5bc   :  { %v486_v21 = vpop.xlane.xlu1 %485 }
 0x5bd   :  { %1472 = vrcp.f32 %v486_v21 }
 0x5c0   :  { %v483_v22 = vpop.xlane.xlu1 %482 }
 0x5c1   :  { %1474 = vrcp.f32 %v483_v22 }
 0x5c4   :  { %v1455_v23 = vpop.permute.xlu1 %1454 }
 0x5c5   :  { %v1457_v28 = vunpack.i.h.bf16 %v1455_v23  ;;  %v1456_v29 = vunpack.i.l.bf16 %v1455_v23 }
 0x5c7   :  { %v1379_v30 = vpack.c.bf16 %v1457_v28, %v1456_v29  ;;  %v1473_v32 = vpop.eup %1472  ;;  %v1399_v28 = vpack.c.bf16 %v895_v26, %v894_v25  ;;  %v896_v29 = vld [vmem:[%s1882_s5 + $0x10] sm:$0xff]  ;;  %v1031_v26 = vld [vmem:[#allocation7 + $0x18] sm:$0xff] }
 0x5c8   :  { %v490_v34 = vmul.f32 %v1473_v32, %v1469_v16  ;;  %v784_v16 = vrot.slane %v1726_v11, %v783_v12  ;;  %v898_v32 = vld [vmem:[%s1882_s5 + $0x20] sm:$0xff]  ;;  %v1030_v25 = vld [vmem:[#allocation7 + $0x10] sm:$0xff] }
 0x5c9   :  { %1380 = vmatprep.subr.bf16.mxu0 %v1379_v30 }
 0x5ca   :  { %1382 = vmatpush3.bf16.msra.mxu0 %v1379_v30  ;;  %v897_v30 = vld [vmem:[%s1882_s5 + $0x18] sm:$0xff] }
 0x5cb   :  { %v1475_v17 = vpop.eup %1474  ;;  %1384 = vmatprep.subr.bf16.mxu0 %v1383_v31 }
 0x5cc   :  { %v489_v33 = vmul.f32 %v1475_v17, %v1471_v19  ;;  %v899_v17 = vld [vmem:[%s1882_s5 + $0x28] sm:$0xff] }
 0x5ce   :  { %1297 = vmatprep.mubr.msk.f32.mxu0 %vm177_vm1, %v489_v33  ;;  %v1407_v33 = vpack.c.bf16 %v899_v17, %v898_v32 }
 0x5cf   :  { %1298 = vmatmul.mubr.msk.f32.vlgmr.msra.gmra.mrb[2].mxu0 %vm177_vm1, %v490_v34  ;;  %v900_v34 = vld [vmem:[%s1882_s5 + $0x30] sm:$0xff] }
 0x5d0   :  { %1386 = vmatpush3.bf16.msra.mxu0 %v1383_v31  ;;  %v1403_v31 = vpack.c.bf16 %v897_v30, %v896_v29  ;;  %v1411_v36 = vpack.c.bf16 %v901_v35, %v900_v34  ;;  %v1600_v29 = vmov 16   ;;  %v1601_v30 = vmov 0  }
 0x5d1   :  { %1388 = vmatprep.subr.bf16.mxu0 %v1387_v37  ;;  %1459 = vset.pattern.permute.xlu1 %v1600_v29  ;;  %v1119_v32 = vsel %vm1117_vm5, 1, %v1601_v30 }
 0x5d2   :  { %1458 = vset.pattern.permute.xlu0 %v1600_v29 }
 0x6a2   :  { %v1299_v38 = vpop.f32.mrb[2].mxu0 }
 0x6a3   :  { %v569_v39 = vpop.f32.mrb[3].mxu0 }
 0x6a4   :  { %1304 = vmatprep.mubr.msk.f32.mxu0 %vm177_vm1, %v569_v39 }
 0x6a5   :  { %1305 = vmatmul.mubr.msk.f32.vlgmr.msra.gmra.mrb[4].mxu0 %vm177_vm1, %v1299_v38 }
 0x6a6   :  { %1390 = vmatpush3.bf16.msra.mxu0 %v1387_v37  ;;  %1311 = vmatprep.mubr.msk.f32.mxu0 %vm177_vm1, %v365_v60  ;;  %v793_v37 = vsub.s32 4, %v1720_v9 }
 0x6a7   :  { %1400 = vmatprep.subr.bf16.mxu0 %v1399_v28 }
 0x6a8   :  { %v794_v38 = vrot.slane %v1726_v11, %v793_v37 }
 0x6ad   :  { %1312 = vmatmul.mubr.msk.f32.vlgmr.msra.gmra.mrb[4].mxu0 %vm177_vm1, %v1285_v59  ;;  %v788_v59 = vld [vmem:[%s1881_s4 + $0x8] sm:$0xff] }
 0x6ae   :  { %1402 = vmatpush3.bf16.msra.mxu0 %v1399_v28  ;;  %v1419_v28 = vpack.c.bf16 %v1031_v26, %v1030_v25 }
 0x6af   :  { %1404 = vmatprep.subr.bf16.mxu0 %v1403_v31 }
 0x6b2   :  { %1406 = vmatpush3.bf16.msra.mxu0 %v1403_v31  ;;  %v1120_v31 = vsel %vm1118_vm4, 1, %v1601_v30 }
 0x6b3   :  { %1408 = vmatprep.subr.bf16.mxu0 %v1407_v33 }
 0x6b6   :  { %1410 = vmatpush3.bf16.msra.mxu0 %v1407_v33 }
 0x6b7   :  { %1412 = vmatprep.subr.bf16.mxu0 %v1411_v36 }
 0x6ba   :  { %1414 = vmatpush3.bf16.msra.mxu0 %v1411_v36 }
 0x780   :  { %v1313_v42 = vpop.f32.mrb[4].mxu0 }
 0x781   :  { %v731_v43 = vpop.f32.mrb[5].mxu0  ;;  %v745_v44 = vadd.f32 %v1313_v42, %v743_v41 }
 0x782   :  { %v744_v45 = vadd.f32 %v743_v41, %v731_v43 }
 0x783   :  { %v747_v48 = vadd.f32 %v745_v44, %v1716_v7  ;;  %v787_v7 = vld [vmem:[%s1881_s4] sm:$0xff] }
 0x784   :  { %v746_v46 = vadd.f32 %v744_v45, %v1712_v5  ;;  %v1391_v60 = vpack.c.bf16 %v788_v59, %v787_v7  ;;  %v904_v59 = vsub.s32 5, %v1720_v9 }
 0x785   :  { %v751_v49 = vsel %vm85_vm0, %v747_v48, 0.0 }
 0x786   :  { %v748_v47 = vsel %vm85_vm0, %v746_v46, 0.0  ;;  %1392 = vmatprep.subr.bf16.mxu1 %v1391_v60 }
 0x787   :  { %749 = vadd.xlane.f32.xlu0 %v748_v47  ;;  %1394 = vmatpush3.bf16.msra.mxu1 %v1391_v60  ;;  %v905_v60 = vrot.slane %v1726_v11, %v904_v59 }
 0x788   :  { %1396 = vmatprep.subr.bf16.mxu1 %v1395_v63 }
 0x78b   :  { %752 = vadd.xlane.f32.xlu0 %v751_v49  ;;  %1398 = vmatpush3.bf16.msra.mxu1 %v1395_v63 }
 0x814   :  { %v750_v50 = vpop.xlane.xlu0 %749 }
 0x815   :  { %v755_v51 = vmul.f32 0.03125, %v750_v50 }
 0x817   :  { %v757_v52 = vsub.f32 %v746_v46, %v755_v51 }
 0x818   :  { %v753_v53 = vpop.xlane.xlu0 %752 }
 0x819   :  { %v756_v54 = vmul.f32 0.03125, %v753_v53  ;;  %v759_v55 = vmul.f32 %v757_v52, %v757_v52 }
 0x81b   :  { %v758_v56 = vsub.f32 %v747_v48, %v756_v54  ;;  %v761_v57 = vsel %vm85_vm0, %v759_v55, 0.0 }
 0x81c   :  { %762 = vadd.xlane.f32.xlu0 %v761_v57 }
 0x81d   :  { %v760_v58 = vmul.f32 %v758_v56, %v758_v56 }
 0x81f   :  { %v764_v5 = vsel %vm85_vm0, %v760_v58, 0.0 }
 0x820   :  { %765 = vadd.xlane.f32.xlu1 %v764_v5 }
 0x831   :  { %1125 = vperm.xlu1 %1459, %v1120_v31  }
 0x8a9   :  { %v763_v0 = vpop.xlane.xlu0 %762 }
 0x8aa   :  { %v767_v1 = vmul.f32 0.03125, %v763_v0 }
 0x8ac   :  { %v769_v2 = vadd.f32 1e-12, %v767_v1 }
 0x8ad   :  { %v766_v3 = vpop.xlane.xlu1 %765 }
 0x8ae   :  { %1476 = vrsqrt.f32 %v769_v2  ;;  %v768_v4 = vmul.f32 0.03125, %v766_v3 }
 0x8b0   :  { %v770_v6 = vadd.f32 1e-12, %v768_v4 }
 0x8b2   :  { %1478 = vrsqrt.f32 %v770_v6 }
 0x8b8   :  { %v1477_v14 = vpop.eup %1476 }
 0x8b9   :  { %v773_v15 = vmul.f32 %v1477_v14, %v757_v52 }
 0x8bb   :  { %v779_v18 = vmul.f32 %v778_v13, %v773_v15 }
 0x8bc   :  { %v1479_v19 = vpop.eup %1478 }
 0x8bd   :  { %v774_v20 = vmul.f32 %v1479_v19, %v758_v56  ;;  %v785_v21 = vadd.f32 %v784_v16, %v779_v18 }
 0x8bf   :  { %v780_v22 = vmul.f32 %v778_v13, %v774_v20  ;;  %1322 = vmatprep.mubr.msk.f32.mxu1 %vm85_vm0, %v785_v21 }
 0x8c1   :  { %v786_v23 = vadd.f32 %v784_v16, %v780_v22  ;;  %v1029_v22 = vld [vmem:[#allocation7 + $0x8] sm:$0xff] }
 0x8c3   :  { %1323 = vmatmul.mubr.msk.f32.vlgmr.msra.gmra.mrb[6].mxu1 %vm85_vm0, %v786_v23 }
 0x996   :  { %v1324_v39 = vpop.f32.mrb[6].mxu1 }
 0x997   :  { %v873_v40 = vadd.f32 %v1324_v39, %v794_v38  ;;  %v867_v41 = vpop.f32.mrb[7].mxu1 }
 0x998   :  { %v868_v42 = vadd.f32 %v867_v41, %v794_v38  ;;  %v1019_v38 = vrot.slane %v1726_v11, %v1018_v24  ;;  %v1025_v41 = vrot.slane %v1726_v11, %v1024_v27 }
 0x999   :  { %v877_v43 = vmul.f32 %v873_v40, %v873_v40 }
 0x99a   :  { %v876_v44 = vmul.f32 %v868_v42, %v868_v42 }
 0x99b   :  { %v879_v45 = vmul.f32 %v877_v43, %v873_v40 }
 0x99c   :  { %v878_v46 = vmul.f32 %v876_v44, %v868_v42 }
 0x99d   :  { %v881_v47 = vmul.f32 0.044715, %v879_v45 }
 0x99e   :  { %v880_v48 = vmul.f32 0.044715, %v878_v46 }
 0x99f   :  { %v883_v49 = vadd.f32 %v881_v47, %v873_v40 }
 0x9a0   :  { %v882_v50 = vadd.f32 %v880_v48, %v868_v42  ;;  %v76_v48 = vld [vmem:[%s1884_s7 + $0x8] sm:$0xff]  ;;  %s1602_s7 = smov [#allocation8]  }
 0x9a1   :  { %v885_v51 = vmul.f32 0.7978846, %v883_v49  ;;  %v1035_v49 = vrot.slane %v76_v48, %v83_v10  ;;  %s1172_s0 = sshll.u32 %s1602_s7, 4  ;;  %s1173_s0 = int_to_ptr.vmem [resolvable:$true] %s1172_s0 }
 0x9a2   :  { %v884_v52 = vmul.f32 0.7978846, %v882_v50  ;;  %v1126_v50 = vpop.permute.xlu1 %1125  ;;  %s1562_s3 = scalar_lea.vmem %s1173_s0, 256  ;;  %p1567_p11 = scmp.lt.s32.totalorder %s1173_s0, %s1173_s0 }
 0x9a3   :  { %1480 = vtanh.f32 %v885_v51  ;;  %vm1128_vm6 = vcmp.eq.s32.totalorder %v1126_v50, 1  ;;  %p1563_p10 = scmp.ne.s32.totalorder %s1173_s0, %s1562_s3  ;;  %p1568_p12 = scmp.lt.s32.totalorder %s1562_s3, %s1562_s3 }
 0x9a4   :  { %1482 = vtanh.f32 %v884_v52 }
 0x9a5   :  { %p1569_p13 = por %p1568_p12, %p1567_p11 }
 0x9a7   :  { %p1570_p0 = pnand %p1569_p13, %p1563_p10 }
 0x9ad   :  { %v1481_v53 = vpop.eup %1480 }
 0x9ae   :  { %v1483_v54 = vpop.eup %1482  ;;  %v889_v55 = vadd.f32 1.0, %v1481_v53 }
 0x9af   :  { %v888_v56 = vadd.f32 1.0, %v1483_v54 }
 0x9b0   :  { %v891_v57 = vmul.f32 0.5, %v889_v55 }
 0x9b1   :  { %v890_v58 = vmul.f32 0.5, %v888_v56 }
 0x9b2   :  { %v893_v7 = vmul.f32 %v891_v57, %v873_v40 }
 0x9b3   :  { %v892_v5 = vmul.f32 %v890_v58, %v868_v42 }
 0x9b5   :  { %1341 = vmatprep.mubr.msk.f32.mxu0 %vm906_vm3, %v892_v5 }
 0x9b6   :  { %1342 = vmatmul.mubr.msk.f32.vlgmr.msra.gmra.mrb[6].mxu0 %vm906_vm3, %v893_v7 }
 0xa89   :  { %v1343_v61 = vpop.f32.mrb[6].mxu0 }
 0xa8a   :  { %v979_v62 = vpop.f32.mrb[7].mxu0  ;;  %v985_v63 = vadd.f32 %v1343_v61, %v905_v60 }
 0xa8b   :  { %v980_v0 = vadd.f32 %v979_v62, %v905_v60 }
 0xa8c   :  { %v989_v3 = vadd.f32 %v985_v63, %v786_v23 }
 0xa8d   :  { %v988_v1 = vadd.f32 %v980_v0, %v785_v21  ;;  %v1028_v21 = vld [vmem:[#allocation7] sm:$0xff] }
 0xa8e   :  { %v993_v4 = vsel %vm85_vm0, %v989_v3, 0.0  ;;  %v1415_v23 = vpack.c.bf16 %v1029_v22, %v1028_v21 }
 0xa8f   :  { %v990_v2 = vsel %vm85_vm0, %v988_v1, 0.0 }
 0xa90   :  { %991 = vadd.xlane.f32.xlu0 %v990_v2  ;;  %1416 = vmatprep.subr.bf16.mxu1 %v1415_v23 }
 0xa91   :  { %1418 = vmatpush3.bf16.msra.mxu1 %v1415_v23 }
 0xa92   :  { %1420 = vmatprep.subr.bf16.mxu1 %v1419_v28 }
 0xa94   :  { %994 = vadd.xlane.f32.xlu0 %v993_v4 }
 0xa95   :  { %1422 = vmatpush3.bf16.msra.mxu1 %v1419_v28 }
 0xb1d   :  { %v992_v6 = vpop.xlane.xlu0 %991 }
 0xb1e   :  { %v996_v8 = vmul.f32 0.03125, %v992_v6 }
 0xb20   :  { %v998_v12 = vsub.f32 %v988_v1, %v996_v8 }
 0xb21   :  { %v995_v13 = vpop.xlane.xlu0 %994 }
 0xb22   :  { %v997_v14 = vmul.f32 0.03125, %v995_v13  ;;  %v1000_v15 = vmul.f32 %v998_v12, %v998_v12 }
 0xb24   :  { %v999_v16 = vsub.f32 %v989_v3, %v997_v14  ;;  %v1002_v18 = vsel %vm85_vm0, %v1000_v15, 0.0 }
 0xb25   :  { %1003 = vadd.xlane.f32.xlu0 %v1002_v18 }
 0xb26   :  { %v1001_v19 = vmul.f32 %v999_v16, %v999_v16 }
 0xb28   :  { %v1005_v20 = vsel %vm85_vm0, %v1001_v19, 0.0 }
 0xb29   :  { %1006 = vadd.xlane.f32.xlu0 %v1005_v20 }
 0xb3f   :  { %1122 = vperm.xlu0 %1458, %v1119_v32  }
 0xbb2   :  { %v1004_v17 = vpop.xlane.xlu0 %1003 }
 0xbb3   :  { %v1008_v33 = vmul.f32 0.03125, %v1004_v17 }
 0xbb5   :  { %v1010_v34 = vadd.f32 1e-12, %v1008_v33 }
 0xbb6   :  { %v1007_v35 = vpop.xlane.xlu0 %1006 }
 0xbb7   :  { %1484 = vrsqrt.f32 %v1010_v34  ;;  %v1009_v36 = vmul.f32 0.03125, %v1007_v35 }
 0xbb9   :  { %v1011_v37 = vadd.f32 1e-12, %v1009_v36 }
 0xbbb   :  { %1486 = vrsqrt.f32 %v1011_v37 }
 0xbbe   :  { %v1123_v51 = vpop.permute.xlu0 %1122 }
 0xbbf   :  { %vm1127_vm7 = vcmp.eq.s32.totalorder %v1123_v51, 1 }
 0xbc1   :  { %v1485_v39 = vpop.eup %1484 }
 0xbc2   :  { %v1014_v40 = vmul.f32 %v1485_v39, %v998_v12 }
 0xbc4   :  { %v1020_v42 = vmul.f32 %v1019_v38, %v1014_v40 }
 0xbc5   :  { %v1487_v43 = vpop.eup %1486 }
 0xbc6   :  { %v1015_v44 = vmul.f32 %v1487_v43, %v999_v16  ;;  %v1026_v45 = vadd.f32 %v1025_v41, %v1020_v42 }
 0xbc8   :  { %v1021_v46 = vmul.f32 %v1019_v38, %v1015_v44  ;;  %1352 = vmatprep.mubr.msk.f32.mxu1 %vm85_vm0, %v1026_v45 }
 0xbca   :  { %v1027_v47 = vadd.f32 %v1025_v41, %v1021_v46 }
 0xbcc   :  { %1353 = vmatmul.mubr.msk.f32.vlgmr.msra.gmra.mrb[8].mxu1 %vm85_vm0, %v1027_v47 }
 0xc9f   :  { %v1354_v11 = vpop.f32.mrb[8].mxu1 }
 0xca0   :  { %v1114_v52 = vadd.f32 %v1354_v11, %v1035_v49  ;;  %v1108_v53 = vpop.f32.mrb[9].mxu1 }
 0xca1   :  { %v1109_v54 = vadd.f32 %v1108_v53, %v1035_v49 }
 0xca2   :  { %v1130_v55 = vsel %vm1128_vm6, -inf, %v1114_v52 }
 0xca3   :  { %v1149_v56 = vrot.slane %v1130_v55, 4  ;;  %v1129_v57 = vsel %vm1127_vm7, -inf, %v1109_v54 }
 0xca4   :  { %v1131_v58 = vrot.slane %v1129_v57, 4 }
 0xca5   :  { %v1150_v5 = vmax.f32 %v1130_v55, %v1149_v56 }
 0xca6   :  { %v1132_v7 = vmax.f32 %v1129_v57, %v1131_v58 }
 0xca7   :  { %v1151_v59 = vrot.slane %v1150_v5, 2 }
 0xca8   :  { %v1133_v60 = vrot.slane %v1132_v7, 2 }
 0xca9   :  { %v1152_v61 = vmax.f32 %v1150_v5, %v1151_v59 }
 0xcaa   :  { %v1134_v62 = vmax.f32 %v1132_v7, %v1133_v60 }
 0xcab   :  { %v1153_v9 = vrot.slane %v1152_v61, 1 }
 0xcac   :  { %v1135_v10 = vrot.slane %v1134_v62, 1 }
 0xcad   :  { %v1154_v63 = vmax.f32 %v1152_v61, %v1153_v9 }
 0xcae   :  { %v1136_v0 = vmax.f32 %v1134_v62, %v1135_v10 }
 0xcaf   :  { %v1155_v1 = vsub.f32 %v1130_v55, %v1154_v63 }
 0xcb0   :  { %v1137_v2 = vsub.f32 %v1129_v57, %v1136_v0 }
 0xcb1   :  { %v1156_v3 = vmul.f32 1.442695, %v1155_v1 }
 0xcb2   :  { %v1138_v4 = vmul.f32 1.442695, %v1137_v2 }
 0xcb3   :  { %1488 = vpow2.f32 %v1156_v3 }
 0xcb4   :  { %1490 = vpow2.f32 %v1138_v4 }
 0xcbd   :  { %v1489_v6 = vpop.eup %1488 }
 0xcbe   :  { %v1491_v8 = vpop.eup %1490  ;;  %v1158_v12 = vrot.slane %v1489_v6, 4 }
 0xcbf   :  { %v1140_v13 = vrot.slane %v1491_v8, 4 }
 0xcc0   :  { %v1159_v14 = vadd.f32 %v1489_v6, %v1158_v12 }
 0xcc1   :  { %v1141_v15 = vadd.f32 %v1491_v8, %v1140_v13 }
 0xcc2   :  { %v1160_v16 = vrot.slane %v1159_v14, 2 }
 0xcc3   :  { %v1142_v18 = vrot.slane %v1141_v15, 2 }
 0xcc4   :  { %v1161_v19 = vadd.f32 %v1160_v16, %v1159_v14 }
 0xcc5   :  { %v1143_v20 = vadd.f32 %v1142_v18, %v1141_v15 }
 0xcc6   :  { %v1162_v21 = vrot.slane %v1161_v19, 1 }
 0xcc7   :  { %v1144_v22 = vrot.slane %v1143_v20, 1 }
 0xcc8   :  { %v1163_v23 = vadd.f32 %v1162_v21, %v1161_v19 }
 0xcc9   :  { %v1145_v25 = vadd.f32 %v1144_v22, %v1143_v20 }
 0xcca   :  { %1492 = vrcp.f32 %v1163_v23 }
 0xccb   :  { %1494 = vrcp.f32 %v1145_v25 }
 0xcd4   :  { %v1493_v26 = vpop.eup %1492 }
 0xcd5   :  { %v1495_v28 = vpop.eup %1494  ;;  %v1165_v29 = vmul.f32 %v1493_v26, %v1489_v6 }
 0xcd6   :  { %v1147_v30 = vmul.f32 %v1495_v28, %v1491_v8 }
 0xcd7   :  { %1166 = vst [vmem:[#allocation8 + $0x8] sm:$0xff] %v1165_v29 }
 0xcd8   :  { %1148 = vst [vmem:[#allocation8] sm:$0xff] %v1147_v30 }
 0xcd9   :  { %1573 = shalt.err (!%p1570_p0)
}
 0xcda   :  { %s1574_s22 = scalar_lea.hbm %s1885_s8, 256 }
 0xcdb   :  { %p1575_p1 = scmp.ne.s32.totalorder %s1885_s8, %s1574_s22  ;;  %p1578_p2 = scmp.lt.u32.totalorder %s1574_s22, %s1885_s8 }
 0xcdd   :  { %p1580_p3 = pnand %p1578_p2, %p1575_p1 }
 0xcdf   :  { %1583 = shalt.err (!%p1580_p3)
}
 0xce0   :  { %1178 = dma.vmem_to_hbm [thread:$0]  %s1173_s0, 256, %s1885_s8, [#allocation4], %s1592_s17, %s1592_s17, %s1593_s18  }
 0xce1   :  { %1588 = dma.done.wait [#allocation4], 256  }
 0xce2   :  { %1589 = vsyncadd [#allocation4], 4294967040 }
 0xce3   :  { %1182 = vsyncpa [#allocation3], 1 }
 0xce4   :  { %1183 = vsyncpa [#allocation6], 1 }
 0xce5   :  { %1184 = vsyncpa [#allocation4], 1 }

</bundles_post_ra>
